<compile_context>
chip_gen: v7x
topology: tpu7x:2x2x1
jax: 0.10.0
libtpu: 0.0.40
codegen_flags: <defaults>
</compile_context>

<pallas_src>
import jax
import jax.numpy as jnp
from jax.experimental import pallas as pl
from jax.experimental.pallas import tpu as pltpu


def _expert_kernel(x_ref, w1_ref, b1_ref, w2_ref, b2_ref, o_ref, acc_ref):
    j = pl.program_id(1)

    @pl.when(j == 0)
    def _():
        acc_ref[...] = jnp.zeros_like(acc_ref)

    # --- Linear 1 (hidden panel j): (tm, emb) @ (emb, th), native dtype -> MXU, f32 acc ---
    h = jnp.dot(x_ref[...], w1_ref[...], preferred_element_type=jnp.float32)
    h = h + b1_ref[...].astype(jnp.float32)

    # --- GELU (tanh approximation), f32; factored to save a VALU multiply, tanh -> EUP ---
    c = 0.7978845608028654  # sqrt(2/pi)
    u = h * (1.0 + 0.044715 * (h * h))
    h = 0.5 * h * (1.0 + jnp.tanh(c * u))

    # --- Linear 2 partial: (tm, th) @ (th, emb), accumulate in f32 scratch ---
    h = h.astype(w2_ref.dtype)  # bf16 feed to MXU when weights are bf16; identity for f32
    acc_ref[...] += jnp.dot(h, w2_ref[...], preferred_element_type=jnp.float32)

    @pl.when(j == pl.num_programs(1) - 1)
    def _():
        o_ref[...] = (acc_ref[...] + b2_ref[...].astype(jnp.float32)).astype(o_ref.dtype)


def _tpu_config():
    """Per-generation token-tile cap and VMEM budget (static, read at trace time)."""
    kind = ""
    try:
        kind = (getattr(jax.devices()[0], "device_kind", "") or "").lower()
    except Exception:  # pragma: no cover - non-TPU / no devices
        pass
    if "v5e" in kind or "v5 lite" in kind or "v5lite" in kind:
        # Crossover ~240 FLOP/B; tm=512 is already compute-bound. 128 MiB physical VMEM.
        return dict(tm_cap=512, vmem_limit=96 * 1024 * 1024, budget=90 * 1024 * 1024,
                    two_cores=False)
    if "v6" in kind:
        # Crossover ~650 FLOP/B; go to tm=1024. 128 MiB physical VMEM.
        return dict(tm_cap=1024, vmem_limit=100 * 1024 * 1024, budget=96 * 1024 * 1024,
                    two_cores=False)
    if "v7" in kind:
        # 64 MiB physical VMEM per TC, 2 TCs share HBM; keep tm<=512 and a tight budget.
        return dict(tm_cap=512, vmem_limit=54 * 1024 * 1024, budget=50 * 1024 * 1024,
                    two_cores=True)
    # Unknown generation: conservative (default scoped VMEM, no explicit limit override).
    return dict(tm_cap=512, vmem_limit=None, budget=28 * 1024 * 1024, two_cores=False)


def _vmem_estimate(tm, th, emb, x_itemsize, w_itemsize, x_bufs, out_bufs):
    """Rough per-call VMEM footprint in bytes (tiles + double-buffered weight panels)."""
    total = 0
    total += x_bufs * tm * emb * x_itemsize          # x tile
    total += out_bufs * tm * emb * x_itemsize        # output tile
    total += tm * emb * 4                            # f32 accumulator scratch
    total += 2 * emb * th * w_itemsize               # w1 panel (double-buffered)
    total += 2 * th * emb * w_itemsize               # w2 panel (double-buffered)
    total += 2 * 8 * max(th, 128) * w_itemsize       # b1 panel (layout-padded, small)
    total += 2 * 8 * max(emb, 128) * w_itemsize      # b2 (small)
    return total


def _pick_tiles(M, emb, hidden, x_itemsize, w_itemsize, cfg):
    """Choose (tm, th, x_bufs) so the footprint stays inside the generation's VMEM budget."""
    budget = cfg["budget"]

    # Token tile: as large as the generation allows; keep >=2 M-tiles on dual-TC chips.
    tm = min(cfg["tm_cap"], M)
    if cfg["two_cores"] and M > 8:
        tm = min(tm, -(-M // 2))
    tm = min(M, ((tm + 7) // 8) * 8)  # sublane-align (or take the full M for tiny inputs)

    # Hidden tile: largest MXU-friendly panel dividing `hidden` that fits the budget.
    candidates = [t for t in (1024, 512, 256, 128) if hidden % t == 0] or [hidden]
    while True:
        for th in candidates:
            if _vmem_estimate(tm, th, emb, x_itemsize, w_itemsize, 2, 2) <= budget:
                return tm, th, 2
            # x/out index maps don't depend on j: single-buffering them is nearly free when
            # there are >=2 hidden steps, and frees 2x(tm, emb) buffers (v7x headroom).
            if hidden // th >= 2 and \
                    _vmem_estimate(tm, th, emb, x_itemsize, w_itemsize, 1, 1) <= budget:
                return tm, th, 1
        if tm <= 8:
            # Nothing fits the budget (e.g. huge odd `hidden`); take the smallest config.
            return tm, candidates[-1], 1
        tm = max(8, ((tm // 2 + 7) // 8) * 8)


@jax.jit
def expert_forward(x, w1, b1, w2, b2):
    """Pallas Expert FFN forward.

    Args:
      x:  (batch, seq, emb_dim)
      w1: (emb_dim, hidden)   b1: (hidden,)
      w2: (hidden, emb_dim)   b2: (emb_dim,)
    Returns:
      (batch, seq, emb_dim), same dtype as x.
    """
    batch, seq, emb = x.shape
    hidden = w1.shape[1]
    M = batch * seq

    cfg = _tpu_config()
    x_itemsize = jnp.dtype(x.dtype).itemsize
    w_itemsize = jnp.dtype(w1.dtype).itemsize
    tm, th, io_bufs = _pick_tiles(M, emb, hidden, x_itemsize, w_itemsize, cfg)

    # Pad M to a multiple of tm: keeps every tile fully defined (no garbage rows into tanh)
    # and keeps the grid exact. Pad rows are zeros and are sliced off at the end.
    n_m_tiles = pl.cdiv(M, tm)
    M_pad = n_m_tiles * tm

    x2 = x.reshape(M, emb)
    if M_pad != M:
        x2 = jnp.pad(x2, ((0, M_pad - M), (0, 0)))
    b1_2d = b1.reshape(1, hidden)
    b2_2d = b2.reshape(1, emb)

    grid = (M_pad // tm, hidden // th)

    # x / out only change with the M index; drop to single-buffering when VMEM is tight.
    io_kwargs = {} if io_bufs == 2 else {"pipeline_mode": pl.Buffered(1)}

    flops = 4 * M * emb * hidden                      # two matmuls, 2*M*emb*hidden each
    transcendentals = M * hidden                      # one tanh per hidden activation
    bytes_accessed = (
        M_pad * emb * x_itemsize                      # x read
        + M_pad * emb * x_itemsize                    # out write
        + grid[0] * (w1.size + w2.size) * w_itemsize  # weight panels re-streamed per M tile
        + (b1.size + b2.size) * w_itemsize
    )

    cp_kwargs = dict(dimension_semantics=("parallel", "arbitrary"))
    if cfg["vmem_limit"] is not None:
        cp_kwargs["vmem_limit_bytes"] = cfg["vmem_limit"]

    out2 = pl.pallas_call(
        _expert_kernel,
        out_shape=jax.ShapeDtypeStruct((M_pad, emb), x.dtype),
        grid_spec=pltpu.PrefetchScalarGridSpec(
            num_scalar_prefetch=0,
            grid=grid,
            in_specs=[
                pl.BlockSpec((tm, emb), lambda i, j: (i, 0), **io_kwargs),  # x tile
                pl.BlockSpec((emb, th), lambda i, j: (0, j)),               # w1 hidden panel
                pl.BlockSpec((1, th), lambda i, j: (0, j)),                 # b1 hidden panel
                pl.BlockSpec((th, emb), lambda i, j: (j, 0)),               # w2 hidden panel
                pl.BlockSpec((1, emb), lambda i, j: (0, 0)),                # b2 (last step)
            ],
            out_specs=pl.BlockSpec((tm, emb), lambda i, j: (i, 0), **io_kwargs),
            scratch_shapes=[pltpu.VMEM((tm, emb), jnp.float32)],            # f32 accumulator
        ),
        compiler_params=pltpu.CompilerParams(**cp_kwargs),
        cost_estimate=pl.CostEstimate(
            flops=flops, transcendentals=transcendentals, bytes_accessed=bytes_accessed),
    )(x2, w1, b1_2d, w2, b2_2d)

    if M_pad != M:
        out2 = out2[:M]
    return out2.reshape(batch, seq, emb)


def _reference(x, w1, b1, w2, b2):
    h = jnp.einsum("bse,eh->bsh", x.astype(jnp.float32), w1.astype(jnp.float32)) + b1
    c = 0.7978845608028654
    h = 0.5 * h * (1.0 + jnp.tanh(c * (h + 0.044715 * h ** 3)))
    o = jnp.einsum("bsh,he->bse", h, w2.astype(jnp.float32)) + b2
    return o.astype(x.dtype)


if __name__ == "__main__":
    # cfg = {"emb_dim": 32}, scaling_factor = 1.0  ->  hidden = int(4 * 32 * 1.0) = 128
    # NOTE: this toy shape is lane-sparse (emb=32 < 128 lanes) and layout-bound by
    # construction; realistic emb (multiples of 128) uses the full vreg/MXU.
    batch, seq, emb = 2, 8, 32
    scaling_factor = 1.0
    hidden = int(4 * emb * scaling_factor)

    key = jax.random.PRNGKey(0)
    kx, k1, k2, k3, k4 = jax.random.split(key, 5)

    x = jax.random.normal(kx, (batch, seq, emb), dtype=jnp.float32)
    # Parameters stored transposed relative to nn.Linear's (out, in) weight layout.
    w1 = jax.random.normal(k1, (emb, hidden), dtype=jnp.float32) * 0.02
    b1 = jax.random.normal(k2, (hidden,), dtype=jnp.float32) * 0.01
    w2 = jax.random.normal(k3, (hidden, emb), dtype=jnp.float32) * 0.02
    b2 = jax.random.normal(k4, (emb,), dtype=jnp.float32) * 0.01

    out = expert_forward(x, w1, b1, w2, b2)
    out = jax.block_until_ready(out)

    ref = _reference(x, w1, b1, w2, b2)
    assert out.shape == (batch, seq, emb)
    assert jnp.allclose(out, ref, atol=1e-4, rtol=1e-4), "mismatch vs reference"

    print("KERNEL_OK")
</pallas_src>

<mosaic_0001>
module attributes {stable_mosaic.version = 11 : i64} {
  func.func @_expert_kernel(%arg0: i32, %arg1: i32, %arg2: memref<16x32xf32, #tpu.memory_space<vmem>>, %arg3: memref<32x128xf32, #tpu.memory_space<vmem>>, %arg4: memref<1x128xf32, #tpu.memory_space<vmem>>, %arg5: memref<128x32xf32, #tpu.memory_space<vmem>>, %arg6: memref<1x32xf32, #tpu.memory_space<vmem>>, %arg7: memref<16x32xf32, #tpu.memory_space<vmem>>, %arg8: memref<16x32xf32, #tpu.memory_space<vmem>>) attributes {dimension_semantics = [#tpu.dimension_semantics<parallel>, #tpu.dimension_semantics<arbitrary>], iteration_bounds = array<i64: 1, 1>, scalar_prefetch = 0 : i64, scratch_operands = 1 : i64, tpu.core_type = #tpu.core_type<tc>, window_params = [{transform_indices = @transform_0, window_bounds = array<i64: 16, 32>}, {transform_indices = @transform_1, window_bounds = array<i64: 32, 128>}, {transform_indices = @transform_2, window_bounds = array<i64: 1, 128>}, {transform_indices = @transform_3, window_bounds = array<i64: 128, 32>}, {pipeline_mode = #tpu.pipeline_mode<synchronous>, transform_indices = @transform_4, window_bounds = array<i64: 1, 32>}, {transform_indices = @transform_5, window_bounds = array<i64: 16, 32>}]} {
    %c0_i32 = arith.constant 0 : i32
    %0 = arith.cmpi eq, %arg1, %c0_i32 : i32
    %1 = arith.extui %0 : i1 to i32
    %c0_i32_0 = arith.constant 0 : i32
    %2 = arith.cmpi ne, %1, %c0_i32_0 : i32
    scf.if %2 {
      %cst_20 = arith.constant 0.000000e+00 : f32
      %31 = vector.broadcast %cst_20 : f32 to vector<16x32xf32>
      %c0_21 = arith.constant 0 : index
      %c0_22 = arith.constant 0 : index
      %32 = vector.load %arg8[%c0_21, %c0_22] : memref<16x32xf32, #tpu.memory_space<vmem>>, vector<16x32xf32>
      tpu.vector_store %arg8[%c0_21, %c0_22], %31 {strides = array<i32>} : memref<16x32xf32, #tpu.memory_space<vmem>>, vector<16x32xf32>,
    } else {
    }
    %c0 = arith.constant 0 : index
    %c0_1 = arith.constant 0 : index
    %3 = vector.load %arg2[%c0, %c0_1] : memref<16x32xf32, #tpu.memory_space<vmem>>, vector<16x32xf32>
    %c0_2 = arith.constant 0 : index
    %c0_3 = arith.constant 0 : index
    %4 = vector.load %arg3[%c0_2, %c0_3] : memref<32x128xf32, #tpu.memory_space<vmem>>, vector<32x128xf32>
    %cst = arith.constant dense<0.000000e+00> : vector<16x128xf32>
    %5 = tpu.matmul %3, %4, %cst {dimension_numbers = #tpu.dot_dimension_numbers<[1], [0], [0], [1], [0, 0, 1, 1], [], []>} : vector<16x32xf32>, vector<32x128xf32>, vector<16x128xf32> -> vector<16x128xf32>
    %c0_4 = arith.constant 0 : index
    %c0_5 = arith.constant 0 : index
    %6 = vector.load %arg4[%c0_4, %c0_5] : memref<1x128xf32, #tpu.memory_space<vmem>>, vector<1x128xf32>
    %7 = vector.broadcast %6 : vector<1x128xf32> to vector<16x128xf32>
    %8 = arith.addf %5, %7 : vector<16x128xf32>
    %9 = arith.mulf %8, %8 : vector<16x128xf32>
    %cst_6 = arith.constant 4.471500e-02 : f32
    %10 = vector.broadcast %cst_6 : f32 to vector<16x128xf32>
    %11 = arith.mulf %10, %9 : vector<16x128xf32>
    %cst_7 = arith.constant 1.000000e+00 : f32
    %12 = vector.broadcast %cst_7 : f32 to vector<16x128xf32>
    %13 = arith.addf %12, %11 : vector<16x128xf32>
    %14 = arith.mulf %8, %13 : vector<16x128xf32>
    %cst_8 = arith.constant 5.000000e-01 : f32
    %15 = vector.broadcast %cst_8 : f32 to vector<16x128xf32>
    %16 = arith.mulf %15, %8 : vector<16x128xf32>
    %cst_9 = arith.constant 0.797884583 : f32
    %17 = vector.broadcast %cst_9 : f32 to vector<16x128xf32>
    %18 = arith.mulf %17, %14 : vector<16x128xf32>
    %19 = math.tanh %18 : vector<16x128xf32>
    %cst_10 = arith.constant 1.000000e+00 : f32
    %20 = vector.broadcast %cst_10 : f32 to vector<16x128xf32>
    %21 = arith.addf %20, %19 : vector<16x128xf32>
    %22 = arith.mulf %16, %21 : vector<16x128xf32>
    %c0_11 = arith.constant 0 : index
    %c0_12 = arith.constant 0 : index
    %23 = vector.load %arg8[%c0_11, %c0_12] : memref<16x32xf32, #tpu.memory_space<vmem>>, vector<16x32xf32>
    %c0_13 = arith.constant 0 : index
    %c0_14 = arith.constant 0 : index
    %24 = vector.load %arg5[%c0_13, %c0_14] : memref<128x32xf32, #tpu.memory_space<vmem>>, vector<128x32xf32>
    %cst_15 = arith.constant dense<0.000000e+00> : vector<16x32xf32>
    %25 = tpu.matmul %22, %24, %cst_15 {dimension_numbers = #tpu.dot_dimension_numbers<[1], [0], [0], [1], [0, 0, 1, 1], [], []>} : vector<16x128xf32>, vector<128x32xf32>, vector<16x32xf32> -> vector<16x32xf32>
    %26 = arith.addf %23, %25 : vector<16x32xf32>
    %c0_16 = arith.constant 0 : index
    %c0_17 = arith.constant 0 : index
    %27 = vector.load %arg8[%c0_16, %c0_17] : memref<16x32xf32, #tpu.memory_space<vmem>>, vector<16x32xf32>
    tpu.vector_store %arg8[%c0_16, %c0_17], %26 {strides = array<i32>} : memref<16x32xf32, #tpu.memory_space<vmem>>, vector<16x32xf32>,
    %c0_i32_18 = arith.constant 0 : i32
    %28 = arith.cmpi eq, %arg1, %c0_i32_18 : i32
    %29 = arith.extui %28 : i1 to i32
    %c0_i32_19 = arith.constant 0 : i32
    %30 = arith.cmpi ne, %29, %c0_i32_19 : i32
    scf.if %30 {
      %c0_20 = arith.constant 0 : index
      %c0_21 = arith.constant 0 : index
      %31 = vector.load %arg8[%c0_20, %c0_21] : memref<16x32xf32, #tpu.memory_space<vmem>>, vector<16x32xf32>
      %c0_22 = arith.constant 0 : index
      %c0_23 = arith.constant 0 : index
      %32 = vector.load %arg6[%c0_22, %c0_23] : memref<1x32xf32, #tpu.memory_space<vmem>>, vector<1x32xf32>
      %33 = vector.broadcast %32 : vector<1x32xf32> to vector<16x32xf32>
      %34 = arith.addf %31, %33 : vector<16x32xf32>
      %c0_24 = arith.constant 0 : index
      %c0_25 = arith.constant 0 : index
      %35 = vector.load %arg7[%c0_24, %c0_25] : memref<16x32xf32, #tpu.memory_space<vmem>>, vector<16x32xf32>
      tpu.vector_store %arg7[%c0_24, %c0_25], %34 {strides = array<i32>} : memref<16x32xf32, #tpu.memory_space<vmem>>, vector<16x32xf32>,
    } else {
    }
    return
  }
  func.func @transform_0(%arg0: i32, %arg1: i32) -> (i32, i32) {
    %c0_i32 = arith.constant 0 : i32
    %c0_i32_0 = arith.constant 0 : i32
    return %arg0, %c0_i32 : i32, i32
  }
  func.func @transform_1(%arg0: i32, %arg1: i32) -> (i32, i32) {
    %c0_i32 = arith.constant 0 : i32
    %c0_i32_0 = arith.constant 0 : i32
    return %c0_i32, %arg1 : i32, i32
  }
  func.func @transform_2(%arg0: i32, %arg1: i32) -> (i32, i32) {
    %c0_i32 = arith.constant 0 : i32
    %c0_i32_0 = arith.constant 0 : i32
    return %c0_i32, %arg1 : i32, i32
  }
  func.func @transform_3(%arg0: i32, %arg1: i32) -> (i32, i32) {
    %c0_i32 = arith.constant 0 : i32
    %c0_i32_0 = arith.constant 0 : i32
    return %arg1, %c0_i32 : i32, i32
  }
  func.func @transform_4(%arg0: i32, %arg1: i32) -> (i32, i32) {
    %c0_i32 = arith.constant 0 : i32
    %c0_i32_0 = arith.constant 0 : i32
    %c0_i32_1 = arith.constant 0 : i32
    return %c0_i32, %c0_i32_0 : i32, i32
  }
  func.func @transform_5(%arg0: i32, %arg1: i32) -> (i32, i32) {
    %c0_i32 = arith.constant 0 : i32
    %c0_i32_0 = arith.constant 0 : i32
    return %arg0, %c0_i32 : i32, i32
  }
}

</mosaic_0001>

<bundles_post_ra>
// kernel: expert_forward.1
= control target key start
LH: loop header
LB: loop body
LE: loop exit
PB: predicated region body
PF: predicated region fallthrough
CT: control target
= control target key end

     0   :  { %vm25_vm0 = vcmask 261120   ;;  %s542_s0 = inlined_call_operand.vmem [shape: f32[16,32], index: 0, kind: input, shape index: {}]   ;;  %s543_s1 = inlined_call_operand.vmem [shape: f32[32,128], index: 1, kind: input, shape index: {}]   ;;  %s544_s2 = inlined_call_operand.vmem [shape: f32[1,128], index: 2, kind: input, shape index: {}]   ;;  %s545_s3 = inlined_call_operand.vmem [shape: f32[128,32], index: 3, kind: input, shape index: {}]   ;;  %s546_s4 = inlined_call_operand.vmem [shape: f32[1,32], index: 4, kind: input, shape index: {}]   ;;  %s547_s5 = inlined_call_operand.hbm [shape: f32[16,32], index: 5, kind: output, shape index: {}]  }
   0x1   :  { %v30_v0 = vld [vmem:[%s543_s1] sm:$0xff]  ;;  %v31_v1 = vld [vmem:[%s543_s1 + $0x8] sm:$0xff]  ;;  %v32_v2 = vld [vmem:[%s543_s1 + $0x10] sm:$0xff] }
   0x2   :  { %v344_v3 = vpack.c.bf16 %v31_v1, %v30_v0  ;;  %v33_v4 = vld [vmem:[%s543_s1 + $0x18] sm:$0xff]  ;;  %v28_v5 = vld [vmem:[%s542_s0] sm:$0xff]  ;;  %v144_v8 = vld [vmem:[%s545_s3 + $0x8] sm:$0xff] }
   0x3   :  { %v348_v6 = vpack.c.bf16 %v33_v4, %v32_v2  ;;  %306 = vmatprep.mubr.msk.f32.mxu0 %vm25_vm0, %v28_v5  ;;  %v143_v7 = vld [vmem:[%s545_s3] sm:$0xff] }
   0x4   :  { %10 = vsyncpa [#allocation4], 0  ;;  %345 = vmatprep.subr.bf16.mxu0 %v344_v3  ;;  %v352_v9 = vpack.c.bf16 %v144_v8, %v143_v7  ;;  %v29_v10 = vld [vmem:[%s542_s0 + $0x8] sm:$0xff]  ;;  %v145_v11 = vld [vmem:[%s545_s3 + $0x10] sm:$0xff]  ;;  %v416_v32 = vmov 0.0   ;;  %s417_s11 = smov [#allocation3]  }
   0x5   :  { %347 = vmatpush3.bf16.msra.mxu0 %v344_v3  ;;  %v146_v12 = vld [vmem:[%s545_s3 + $0x18] sm:$0xff]  ;;  %v147_v14 = vld [vmem:[%s545_s3 + $0x20] sm:$0xff]  ;;  %v148_v15 = vld [vmem:[%s545_s3 + $0x28] sm:$0xff]  ;;  %27 = vst.msk [vmem:[#allocation2 + $0x8] sm:$0xff] %vm25_vm0, %v416_v32  ;;  %s259_s12 = sshll.u32 %s417_s11, 4  ;;  %s260_s12 = int_to_ptr.vmem [resolvable:$true] %s259_s12 }
   0x6   :  { %349 = vmatprep.subr.bf16.mxu0 %v348_v6  ;;  %353 = vmatprep.subr.bf16.mxu1 %v352_v9  ;;  %v356_v13 = vpack.c.bf16 %v146_v12, %v145_v11  ;;  %v360_v16 = vpack.c.bf16 %v148_v15, %v147_v14  ;;  %v149_v17 = vld [vmem:[%s545_s3 + $0x30] sm:$0xff]  ;;  %v150_v18 = vld [vmem:[%s545_s3 + $0x38] sm:$0xff]  ;;  %v151_v20 = vld [vmem:[%s545_s3 + $0x40] sm:$0xff]  ;;  %26 = vst.msk [vmem:[#allocation2] sm:$0xff] %vm25_vm0, %v416_v32  ;;  %s392_s13 = scalar_lea.vmem %s260_s12, 256  ;;  %p397_p1 = scmp.lt.s32.totalorder %s260_s12, %s260_s12 }
   0x7   :  { %355 = vmatpush3.bf16.msra.mxu1 %v352_v9  ;;  %v364_v19 = vpack.c.bf16 %v150_v18, %v149_v17  ;;  %v152_v21 = vld [vmem:[%s545_s3 + $0x48] sm:$0xff]  ;;  %v153_v23 = vld [vmem:[%s545_s3 + $0x50] sm:$0xff]  ;;  %v154_v24 = vld [vmem:[%s545_s3 + $0x58] sm:$0xff]  ;;  %p393_p0 = scmp.ne.s32.totalorder %s260_s12, %s392_s13  ;;  %p398_p2 = scmp.lt.s32.totalorder %s392_s13, %s392_s13 }
   0x8   :  { %357 = vmatprep.subr.bf16.mxu1 %v356_v13  ;;  %v368_v22 = vpack.c.bf16 %v152_v21, %v151_v20  ;;  %v155_v25 = vld [vmem:[%s545_s3 + $0x60] sm:$0xff]  ;;  %v372_v26 = vpack.c.bf16 %v154_v24, %v153_v23  ;;  %v156_v27 = vld [vmem:[%s545_s3 + $0x68] sm:$0xff]  ;;  %v157_v29 = vld [vmem:[%s545_s3 + $0x70] sm:$0xff] }
   0x9   :  { %351 = vmatpush3.bf16.msra.mxu0 %v348_v6  ;;  %v376_v28 = vpack.c.bf16 %v156_v27, %v155_v25  ;;  %v158_v30 = vld [vmem:[%s545_s3 + $0x78] sm:$0xff]  ;;  %v270_v33 = vld [vmem:[%s544_s2] ss:$0 sm:$0xff]  ;;  %p399_p3 = por %p398_p2, %p397_p1 }
   0xa   :  { %v380_v31 = vpack.c.bf16 %v158_v30, %v157_v29  ;;  %v273_v62 = vld [vmem:[%s546_s4] ss:$0 sm:$0xff] }
   0xb   :  { %359 = vmatpush3.bf16.msra.mxu1 %v356_v13  ;;  %p400_p4 = pnand %p399_p3, %p393_p0 }
   0xc   :  { %307 = vmatmul.mubr.msk.f32.vlgmr.msra.gmra.mrb[0].mxu0 %vm25_vm0, %v29_v10  ;;  %361 = vmatprep.subr.bf16.mxu1 %v360_v16  ;;  %v142_v56 = vld [vmem:[#allocation2 + $0x8] sm:$0xff] }
   0xd   :  { %v141_v57 = vld [vmem:[#allocation2] sm:$0xff] }
   0xf   :  { %363 = vmatpush3.bf16.msra.mxu1 %v360_v16 }
  0x10   :  { %365 = vmatprep.subr.bf16.mxu1 %v364_v19 }
  0x13   :  { %367 = vmatpush3.bf16.msra.mxu1 %v364_v19 }
  0x14   :  { %369 = vmatprep.subr.bf16.mxu1 %v368_v22 }
  0x17   :  { %371 = vmatpush3.bf16.msra.mxu1 %v368_v22 }
  0x18   :  { %373 = vmatprep.subr.bf16.mxu1 %v372_v26 }
  0x1b   :  { %375 = vmatpush3.bf16.msra.mxu1 %v372_v26 }
  0x1c   :  { %377 = vmatprep.subr.bf16.mxu1 %v376_v28 }
  0x1f   :  { %379 = vmatpush3.bf16.msra.mxu1 %v376_v28 }
  0x20   :  { %381 = vmatprep.subr.bf16.mxu1 %v380_v31 }
  0x23   :  { %383 = vmatpush3.bf16.msra.mxu1 %v380_v31 }
  0xdf   :  { %v308_v34 = vpop.f32.mrb[0].mxu0 }
  0xe0   :  { %v120_v35 = vadd.f32 %v308_v34, %v270_v33  ;;  %v114_v36 = vpop.f32.mrb[1].mxu0 }
  0xe1   :  { %v115_v37 = vadd.f32 %v270_v33, %v114_v36 }
  0xe2   :  { %v124_v38 = vmul.f32 %v120_v35, %v120_v35  ;;  %v132_v53 = vmul.f32 0.5, %v120_v35 }
  0xe3   :  { %v123_v39 = vmul.f32 %v115_v37, %v115_v37  ;;  %v131_v51 = vmul.f32 0.5, %v115_v37 }
  0xe4   :  { %v126_v40 = vmul.f32 0.044715, %v124_v38 }
  0xe5   :  { %v125_v41 = vmul.f32 0.044715, %v123_v39 }
  0xe6   :  { %v128_v42 = vadd.f32 1.0, %v126_v40 }
  0xe7   :  { %v127_v43 = vadd.f32 1.0, %v125_v41 }
  0xe8   :  { %v130_v44 = vmul.f32 %v128_v42, %v120_v35 }
  0xe9   :  { %v129_v45 = vmul.f32 %v127_v43, %v115_v37 }
  0xea   :  { %v134_v46 = vmul.f32 0.7978846, %v130_v44 }
  0xeb   :  { %v133_v47 = vmul.f32 0.7978846, %v129_v45 }
  0xec   :  { %388 = vtanh.f32 %v134_v46 }
  0xed   :  { %390 = vtanh.f32 %v133_v47 }
  0xf6   :  { %v389_v48 = vpop.eup %388 }
  0xf7   :  { %v391_v49 = vpop.eup %390  ;;  %v138_v50 = vadd.f32 1.0, %v389_v48 }
  0xf8   :  { %v137_v52 = vadd.f32 1.0, %v391_v49 }
  0xf9   :  { %v140_v55 = vmul.f32 %v138_v50, %v132_v53 }
  0xfa   :  { %v139_v54 = vmul.f32 %v137_v52, %v131_v51 }
  0xfc   :  { %341 = vmatprep.mubr.f32.mxu1 %v139_v54 }
  0xfd   :  { %342 = vmatmul.mubr.f32.vlgmr.msra.gmra.mrb[0].mxu1 %v140_v55 }
 0x1d0   :  { %v343_v58 = vpop.f32.mrb[0].mxu1 }
 0x1d1   :  { %v235_v59 = vadd.f32 %v343_v58, %v142_v56  ;;  %v225_v60 = vpop.f32.mrb[1].mxu1 }
 0x1d2   :  { %v234_v61 = vadd.f32 %v225_v60, %v141_v57 }
 0x1d3   :  { %237 = vst.msk [vmem:[#allocation2 + $0x8] sm:$0xff] %vm25_vm0, %v235_v59 }
 0x1d4   :  { %236 = vst.msk [vmem:[#allocation2] sm:$0xff] %vm25_vm0, %v234_v61 }
 0x1da   :  { %v242_v63 = vld [vmem:[#allocation2 + $0x8] sm:$0xff] }
 0x1db   :  { %v241_v0 = vld [vmem:[#allocation2] sm:$0xff]  ;;  %v251_v1 = vadd.f32 %v273_v62, %v242_v63 }
 0x1dc   :  { %v250_v2 = vadd.f32 %v273_v62, %v241_v0 }
 0x1dd   :  { %253 = vst.msk [vmem:[#allocation3 + $0x8] sm:$0xff] %vm25_vm0, %v251_v1 }
 0x1de   :  { %252 = vst.msk [vmem:[#allocation3] sm:$0xff] %vm25_vm0, %v250_v2 }
 0x1df   :  { %403 = shalt.err (!%p400_p4)
}
 0x1e0   :  { %s404_s15 = scalar_lea.hbm %s547_s5, 256 }
 0x1e1   :  { %p405_p5 = scmp.ne.s32.totalorder %s547_s5, %s404_s15  ;;  %p408_p6 = scmp.lt.u32.totalorder %s404_s15, %s547_s5 }
 0x1e3   :  { %p410_p7 = pnand %p408_p6, %p405_p5 }
 0x1e5   :  { %413 = shalt.err (!%p410_p7)
}
 0x1e6   :  { %s418_s19 = smov 128   ;;  %s419_s20 = smov 8  }
 0x1e7   :  { %265 = dma.vmem_to_hbm [thread:$0]  %s260_s12, 256, %s547_s5, [#allocation4], %s418_s19, %s418_s19, %s419_s20  }
 0x1e8   :  { %414 = dma.done.wait [#allocation4], 256  }
 0x1e9   :  { %415 = vsyncadd [#allocation4], 4294967040 }
 0x1ea   :  { %269 = vsyncpa [#allocation4], 1 }

</bundles_post_ra>
